<compile_context>
chip_gen: v7x
topology: tpu7x:2x2x1
jax: 0.10.0
libtpu: 0.0.40
codegen_flags: <defaults>
</compile_context>

<pallas_src>
import functools

import jax
import jax.numpy as jnp
from jax.experimental import pallas as pl
from jax.experimental.pallas import tpu as pltpu

LANE = 128
SUBLANE = 8


def _round_up(x, m):
    return ((x + m - 1) // m) * m


def _tpu_vmem_capacity():
    try:
        return int(pltpu.get_tpu_info().vmem_capacity_bytes)
    except Exception:
        return 64 * 1024 * 1024  # conservative (v7x-sized) fallback


_VMEM_CAP = _tpu_vmem_capacity()
# v5e/v6e: 128 MiB physical VMEM -> generous scoped limit + bigger batch tiles.
# v7x: 64 MiB physical -> stay conservative (32 MiB scoped, 512-row tiles).
_VMEM_LIMIT = int(min(_VMEM_CAP // 2, 96 * 1024 * 1024))
_MAX_BATCH_TILE = 1024 if _VMEM_CAP >= 100 * 1024 * 1024 else 512


def _batch_tiling(b):
    """Even-split batch tiling: ceil(b/max_tile) tiles of round_up(b/n_tiles, 8) rows.

    Bounds batch padding to <8 rows even for awkward batch sizes.
    Returns (tile_rows, padded_batch)."""
    n_tiles = max(1, -(-b // _MAX_BATCH_TILE))
    tile = _round_up(-(-b // n_tiles), SUBLANE)
    return tile, tile * n_tiles


# ----------------------------------------------------------------------------
# Pallas kernels
# ----------------------------------------------------------------------------
def _mlp_fwd_kernel(x_ref, w1_ref, b1_ref, w2_ref, b2_ref, o_ref):
    """Fused Linear -> ReLU -> Linear on one batch tile (activations unpadded in HBM)."""
    x = x_ref[...]  # already streamed in the matmul dtype
    h = jnp.dot(x, w1_ref[...], preferred_element_type=jnp.float32) + b1_ref[...]
    h = jnp.maximum(h, 0.0)
    o = jnp.dot(h.astype(w2_ref.dtype), w2_ref[...],
                preferred_element_type=jnp.float32) + b2_ref[...]
    o_ref[...] = o.astype(o_ref.dtype)


def _mlp_mse_kernel(b_true_ref, x_ref, w1_ref, b1_ref, w2_ref, b2_ref, y_ref,
                    psum_ref, *, tile_b):
    """Loss-only fused forward + per-tile squared-error partial sum.

    No prediction writeback (training/validation discard it).  Each grid step emits
    one SMEM partial sum -> the batch axis is "parallel" (megacore-shardable on v7x);
    the tiny final reduction + 1/N scale happens in plain JAX.  Padded batch rows are
    masked only on the single tile that contains them (pl.when gate).
    """
    i = pl.program_id(0)
    b_true = b_true_ref[0]

    x = x_ref[...]
    h = jnp.dot(x, w1_ref[...], preferred_element_type=jnp.float32) + b1_ref[...]
    h = jnp.maximum(h, 0.0)
    o = jnp.dot(h.astype(w2_ref.dtype), w2_ref[...],
                preferred_element_type=jnp.float32) + b2_ref[...]
    d = o - y_ref[...].astype(jnp.float32)

    tile_end = (i + 1) * tile_b

    @pl.when(tile_end <= b_true)            # interior tiles: no mask work
    def _():
        psum_ref[0, 0] = jnp.sum(d * d)

    @pl.when(tile_end > b_true)             # only the tile containing padded rows
    def _():
        row = jax.lax.broadcasted_iota(jnp.int32, d.shape, 0)
        dm = jnp.where(i * tile_b + row < b_true, d, 0.0)
        psum_ref[0, 0] = jnp.sum(dm * dm)


# ----------------------------------------------------------------------------
# Parameter packing (pad only the hidden dim; Din/Dout stay natural in HBM)
# ----------------------------------------------------------------------------
def make_params(w1, b1, w2, b2, matmul_dtype=jnp.float32):
    din, h = w1.shape
    h2, dout = w2.shape
    assert h == h2
    # TODO(synk): for large real H/Dout on v6e/v7x pad to 256 (2x256^2 MXU); 128 is
    # native on v5e and plenty at these demo sizes.
    h_p = _round_up(h, LANE)

    w1_p = jnp.zeros((din, h_p), matmul_dtype).at[:, :h].set(w1.astype(matmul_dtype))
    b1_p = jnp.zeros((1, h_p), jnp.float32).at[:, :h].set(
        jnp.reshape(b1, (1, h)).astype(jnp.float32))
    w2_p = jnp.zeros((h_p, dout), matmul_dtype).at[:h, :].set(w2.astype(matmul_dtype))
    b2_p = jnp.reshape(b2, (1, dout)).astype(jnp.float32)

    return dict(w1=w1_p, b1=b1_p, w2=w2_p, b2=b2_p, din=din, h=h, dout=dout)


# ----------------------------------------------------------------------------
# Wrappers
# ----------------------------------------------------------------------------
def forecast_forward(x, params):
    """x: (B, L, F) -> (B, T, F) forecast (pure forward, no loss)."""
    w1, b1, w2, b2 = params["w1"], params["b1"], params["w2"], params["b2"]
    B, L, F = x.shape
    din, dout = params["din"], params["dout"]
    assert L * F == din
    T = dout // F

    tb, b_pad = _batch_tiling(B)
    # Stream x in the matmul dtype; no Din column padding, only <8 rows of batch pad.
    x2 = x.reshape(B, din).astype(w1.dtype)
    if b_pad != B:
        x2 = jnp.pad(x2, ((0, b_pad - B), (0, 0)))

    # TODO(synk): on v7x, pipeline_mode=pl.Buffered(1) on the grid-invariant weight
    # specs would skip their double-buffering and free VMEM headroom.
    out = pl.pallas_call(
        _mlp_fwd_kernel,
        out_shape=jax.ShapeDtypeStruct((b_pad, dout), x.dtype),
        grid_spec=pltpu.PrefetchScalarGridSpec(
            num_scalar_prefetch=0,
            grid=(b_pad // tb,),
            in_specs=[
                pl.BlockSpec((tb, din), lambda i: (i, 0)),
                pl.BlockSpec(w1.shape, lambda i: (0, 0)),
                pl.BlockSpec(b1.shape, lambda i: (0, 0)),
                pl.BlockSpec(w2.shape, lambda i: (0, 0)),
                pl.BlockSpec(b2.shape, lambda i: (0, 0)),
            ],
            out_specs=pl.BlockSpec((tb, dout), lambda i: (i, 0)),
        ),
        compiler_params=pltpu.CompilerParams(
            dimension_semantics=("parallel",),
            vmem_limit_bytes=_VMEM_LIMIT,
        ),
    )(x2, w1, b1, w2, b2)

    out = out if b_pad == B else out[:B]
    return out.reshape(B, T, F)


def forecast_loss(x, y, params):
    """Single fused pallas_call computing the MSE loss only (no prediction writeback)."""
    w1, b1, w2, b2 = params["w1"], params["b1"], params["w2"], params["b2"]
    B, L, F = x.shape
    din, dout = params["din"], params["dout"]
    assert L * F == din

    tb, b_pad = _batch_tiling(B)
    n_tiles = b_pad // tb

    x2 = x.reshape(B, din).astype(w1.dtype)
    y2 = y.reshape(B, dout).astype(jnp.float32)
    if b_pad != B:
        x2 = jnp.pad(x2, ((0, b_pad - B), (0, 0)))
        y2 = jnp.pad(y2, ((0, b_pad - B), (0, 0)))

    # Scalar-prefetch the true batch size so ragged batches with the same padded
    # shape / grid do not trigger a recompile.
    b_true = jnp.asarray([B], dtype=jnp.int32)

    kernel = functools.partial(_mlp_mse_kernel, tile_b=tb)

    psums = pl.pallas_call(
        kernel,
        out_shape=jax.ShapeDtypeStruct((n_tiles, 1), jnp.float32),
        grid_spec=pltpu.PrefetchScalarGridSpec(
            num_scalar_prefetch=1,
            grid=(n_tiles,),
            in_specs=[
                pl.BlockSpec((tb, din), lambda i, bt: (i, 0)),
                pl.BlockSpec(w1.shape, lambda i, bt: (0, 0)),
                pl.BlockSpec(b1.shape, lambda i, bt: (0, 0)),
                pl.BlockSpec(w2.shape, lambda i, bt: (0, 0)),
                pl.BlockSpec(b2.shape, lambda i, bt: (0, 0)),
                pl.BlockSpec((tb, dout), lambda i, bt: (i, 0)),
            ],
            out_specs=pl.BlockSpec((1, 1), lambda i, bt: (i, 0),
                                   memory_space=pltpu.MemorySpace.SMEM),
        ),
        compiler_params=pltpu.CompilerParams(
            # Per-tile partial sums -> batch axis is embarrassingly parallel.
            dimension_semantics=("parallel",),
            vmem_limit_bytes=_VMEM_LIMIT,
        ),
    )(b_true, x2, w1, b1, w2, b2, y2)

    return jnp.sum(psums) / (B * dout)


class Forecasting:
    """JAX/Pallas analogue of the PyTorch Forecasting LightningModule."""

    def __init__(self, model_params, matmul_dtype=jnp.float32):
        # matmul_dtype=jnp.bfloat16 recommended on v6e/v7x: halves the streamed x
        # bytes and the MXU operand width while keeping f32 accumulation.
        w1, b1, w2, b2 = model_params
        self.params = make_params(w1, b1, w2, b2, matmul_dtype)

    def forward(self, x):
        return forecast_forward(x, self.params)

    def training_step(self, batch, batch_idx):
        x, y = batch
        loss = forecast_loss(x, y, self.params)
        # TODO(synk): self.log('loss', ..., prog_bar=True) has no Pallas equivalent.
        return loss

    def validation_step(self, batch, batch_idx):
        x, y = batch
        return forecast_loss(x, y, self.params)


# ----------------------------------------------------------------------------
# Deterministic setup + smoke test
# ----------------------------------------------------------------------------
if __name__ == "__main__":
    key = jax.random.PRNGKey(0)
    B, L, F = 8, 8, 4          # batch, input sequence length, features per step
    H = 64                     # hidden width of the synthetic forecaster
    T = 4                      # forecast horizon
    Din, Dout = L * F, T * F

    k_x, k_y, k_w1, k_b1, k_w2, k_b2 = jax.random.split(key, 6)
    x = jax.random.normal(k_x, (B, L, F), dtype=jnp.float32)
    y = jax.random.normal(k_y, (B, T, F), dtype=jnp.float32)

    # Deterministic synthetic parameters (no checkpoint load).
    w1 = jax.random.normal(k_w1, (Din, H), dtype=jnp.float32) * 0.1
    b1 = jax.random.normal(k_b1, (H,), dtype=jnp.float32) * 0.1
    w2 = jax.random.normal(k_w2, (H, Dout), dtype=jnp.float32) * 0.1
    b2 = jax.random.normal(k_b2, (Dout,), dtype=jnp.float32) * 0.1

    module = Forecasting((w1, b1, w2, b2), matmul_dtype=jnp.float32)

    out = module.forward(x)
    train_loss = module.training_step((x, y), batch_idx=0)
    val_loss = module.validation_step((x, y), batch_idx=0)
    jax.block_until_ready((out, train_loss, val_loss))

    # Pure-JAX reference.
    x2 = x.reshape(B, Din)
    h_ref = jnp.maximum(x2 @ w1 + b1[None, :], 0.0)
    out_ref = (h_ref @ w2 + b2[None, :]).reshape(B, T, F)
    loss_ref = jnp.mean((out_ref - y) ** 2)

    assert jnp.allclose(out, out_ref, atol=1e-5, rtol=1e-5)
    assert jnp.allclose(train_loss, loss_ref, atol=1e-5, rtol=1e-5)
    assert jnp.allclose(val_loss, loss_ref, atol=1e-5, rtol=1e-5)

    # Ragged-batch case (exercises the gated batch-padding mask in the loss kernel).
    B2 = 10
    k_x2, k_y2 = jax.random.split(k_x)
    xr = jax.random.normal(k_x2, (B2, L, F), dtype=jnp.float32)
    yr = jax.random.normal(k_y2, (B2, T, F), dtype=jnp.float32)
    pred_r = forecast_forward(xr, module.params)
    loss_r = forecast_loss(xr, yr, module.params)
    jax.block_until_ready((pred_r, loss_r))
    h_r = jnp.maximum(xr.reshape(B2, Din) @ w1 + b1[None, :], 0.0)
    out_r_ref = (h_r @ w2 + b2[None, :]).reshape(B2, T, F)
    loss_r_ref = jnp.mean((out_r_ref - yr) ** 2)
    assert jnp.allclose(pred_r, out_r_ref, atol=1e-5, rtol=1e-5)
    assert jnp.allclose(loss_r, loss_r_ref, atol=1e-5, rtol=1e-5)

    print("KERNEL_OK")
</pallas_src>

<mosaic_0001>
module attributes {stable_mosaic.version = 11 : i64} {
  func.func @_mlp_fwd_kernel(%arg0: i32, %arg1: memref<8x32xf32, #tpu.memory_space<vmem>>, %arg2: memref<32x128xf32, #tpu.memory_space<vmem>>, %arg3: memref<1x128xf32, #tpu.memory_space<vmem>>, %arg4: memref<128x16xf32, #tpu.memory_space<vmem>>, %arg5: memref<1x16xf32, #tpu.memory_space<vmem>>, %arg6: memref<8x16xf32, #tpu.memory_space<vmem>>) attributes {dimension_semantics = [#tpu.dimension_semantics<parallel>], iteration_bounds = array<i64: 1>, scalar_prefetch = 0 : i64, scratch_operands = 0 : i64, tpu.core_type = #tpu.core_type<tc>, window_params = [{transform_indices = @transform_0, window_bounds = array<i64: 8, 32>}, {pipeline_mode = #tpu.pipeline_mode<synchronous>, transform_indices = @transform_1, window_bounds = array<i64: 32, 128>}, {pipeline_mode = #tpu.pipeline_mode<synchronous>, transform_indices = @transform_2, window_bounds = array<i64: 1, 128>}, {pipeline_mode = #tpu.pipeline_mode<synchronous>, transform_indices = @transform_3, window_bounds = array<i64: 128, 16>}, {pipeline_mode = #tpu.pipeline_mode<synchronous>, transform_indices = @transform_4, window_bounds = array<i64: 1, 16>}, {transform_indices = @transform_5, window_bounds = array<i64: 8, 16>}]} {
    %c0 = arith.constant 0 : index
    %c0_0 = arith.constant 0 : index
    %0 = vector.load %arg1[%c0, %c0_0] : memref<8x32xf32, #tpu.memory_space<vmem>>, vector<8x32xf32>
    %c0_1 = arith.constant 0 : index
    %c0_2 = arith.constant 0 : index
    %1 = vector.load %arg2[%c0_1, %c0_2] : memref<32x128xf32, #tpu.memory_space<vmem>>, vector<32x128xf32>
    %cst = arith.constant dense<0.000000e+00> : vector<8x128xf32>
    %2 = tpu.matmul %0, %1, %cst {dimension_numbers = #tpu.dot_dimension_numbers<[1], [0], [0], [1], [0, 0, 1, 1], [], []>} : vector<8x32xf32>, vector<32x128xf32>, vector<8x128xf32> -> vector<8x128xf32>
    %c0_3 = arith.constant 0 : index
    %c0_4 = arith.constant 0 : index
    %3 = vector.load %arg3[%c0_3, %c0_4] : memref<1x128xf32, #tpu.memory_space<vmem>>, vector<1x128xf32>
    %4 = vector.broadcast %3 : vector<1x128xf32> to vector<8x128xf32>
    %5 = arith.addf %2, %4 : vector<8x128xf32>
    %cst_5 = arith.constant 0.000000e+00 : f32
    %6 = vector.broadcast %cst_5 : f32 to vector<8x128xf32>
    %7 = arith.maximumf %5, %6 : vector<8x128xf32>
    %c0_6 = arith.constant 0 : index
    %c0_7 = arith.constant 0 : index
    %8 = vector.load %arg4[%c0_6, %c0_7] : memref<128x16xf32, #tpu.memory_space<vmem>>, vector<128x16xf32>
    %cst_8 = arith.constant dense<0.000000e+00> : vector<8x16xf32>
    %9 = tpu.matmul %7, %8, %cst_8 {dimension_numbers = #tpu.dot_dimension_numbers<[1], [0], [0], [1], [0, 0, 1, 1], [], []>} : vector<8x128xf32>, vector<128x16xf32>, vector<8x16xf32> -> vector<8x16xf32>
    %c0_9 = arith.constant 0 : index
    %c0_10 = arith.constant 0 : index
    %10 = vector.load %arg5[%c0_9, %c0_10] : memref<1x16xf32, #tpu.memory_space<vmem>>, vector<1x16xf32>
    %11 = vector.broadcast %10 : vector<1x16xf32> to vector<8x16xf32>
    %12 = arith.addf %9, %11 : vector<8x16xf32>
    %c0_11 = arith.constant 0 : index
    %c0_12 = arith.constant 0 : index
    %13 = vector.load %arg6[%c0_11, %c0_12] : memref<8x16xf32, #tpu.memory_space<vmem>>, vector<8x16xf32>
    tpu.vector_store %arg6[%c0_11, %c0_12], %12 {strides = array<i32>} : memref<8x16xf32, #tpu.memory_space<vmem>>, vector<8x16xf32>,
    return
  }
  func.func @transform_0(%arg0: i32) -> (i32, i32) {
    %c0_i32 = arith.constant 0 : i32
    %c0_i32_0 = arith.constant 0 : i32
    return %arg0, %c0_i32 : i32, i32
  }
  func.func @transform_1(%arg0: i32) -> (i32, i32) {
    %c0_i32 = arith.constant 0 : i32
    %c0_i32_0 = arith.constant 0 : i32
    %c0_i32_1 = arith.constant 0 : i32
    return %c0_i32, %c0_i32_0 : i32, i32
  }
  func.func @transform_2(%arg0: i32) -> (i32, i32) {
    %c0_i32 = arith.constant 0 : i32
    %c0_i32_0 = arith.constant 0 : i32
    %c0_i32_1 = arith.constant 0 : i32
    return %c0_i32, %c0_i32_0 : i32, i32
  }
  func.func @transform_3(%arg0: i32) -> (i32, i32) {
    %c0_i32 = arith.constant 0 : i32
    %c0_i32_0 = arith.constant 0 : i32
    %c0_i32_1 = arith.constant 0 : i32
    return %c0_i32, %c0_i32_0 : i32, i32
  }
  func.func @transform_4(%arg0: i32) -> (i32, i32) {
    %c0_i32 = arith.constant 0 : i32
    %c0_i32_0 = arith.constant 0 : i32
    %c0_i32_1 = arith.constant 0 : i32
    return %c0_i32, %c0_i32_0 : i32, i32
  }
  func.func @transform_5(%arg0: i32) -> (i32, i32) {
    %c0_i32 = arith.constant 0 : i32
    %c0_i32_0 = arith.constant 0 : i32
    return %arg0, %c0_i32 : i32, i32
  }
}

</mosaic_0001>

<bundles_post_ra>
// kernel: tpu_custom_call.1
= control target key start
LH: loop header
LB: loop body
LE: loop exit
PB: predicated region body
PF: predicated region fallthrough
CT: control target
= control target key end

     0   :  { %v346_v3 = vmov 0.0|0.0   ;;  %vm347_vm0 = vmmov 0   ;;  %v348_v6 = vmov 0.0   ;;  %s461_s0 = inlined_call_operand.vmem [shape: f32[8,32], index: 0, kind: input, shape index: {}]   ;;  %s462_s1 = inlined_call_operand.vmem [shape: f32[32,128], index: 1, kind: input, shape index: {}]   ;;  %s463_s2 = inlined_call_operand.vmem [shape: f32[1,128], index: 2, kind: input, shape index: {}]   ;;  %s464_s3 = inlined_call_operand.vmem [shape: f32[128,16], index: 3, kind: input, shape index: {}]   ;;  %s465_s4 = inlined_call_operand.vmem [shape: f32[1,16], index: 4, kind: input, shape index: {}]   ;;  %s466_s5 = inlined_call_operand.hbm [shape: f32[8,16], index: 5, kind: output, shape index: {}]  }
   0x1   :  { %v22_v0 = vld [vmem:[%s462_s1] sm:$0xff]  ;;  %v23_v1 = vld [vmem:[%s462_s1 + $0x8] sm:$0xff]  ;;  %v24_v2 = vld [vmem:[%s462_s1 + $0x10] sm:$0xff]  ;;  %288 = vmatprep.subr.bf16.mxu0 %v346_v3  ;;  %250 = vmatprep.mubr.msk.f32.mxu0 %vm347_vm0, %v348_v6 }
   0x2   :  { %v289_v4 = vpack.c.bf16 %v23_v1, %v22_v0  ;;  %v25_v5 = vld [vmem:[%s462_s1 + $0x18] sm:$0xff]  ;;  %v108_v7 = vld [vmem:[%s464_s3] sm:$0xff]  ;;  %294 = vmatprep.subr.bf16.mxu1 %v346_v3  ;;  %v109_v8 = vld [vmem:[%s464_s3 + $0x8] sm:$0xff]  ;;  %285 = vmatprep.mubr.msk.f32.mxu1 %vm347_vm0, %v348_v6 }
   0x3   :  { %v110_v9 = vld [vmem:[%s464_s3 + $0x10] sm:$0xff]  ;;  %v111_v10 = vld [vmem:[%s464_s3 + $0x18] sm:$0xff]  ;;  %v292_v11 = vpack.c.bf16 %v25_v5, %v24_v2  ;;  %v295_v12 = vpack.c.bf16 %v109_v8, %v108_v7  ;;  %v112_v14 = vld [vmem:[%s464_s3 + $0x20] sm:$0xff] }
   0x4   :  { %290 = vmatpush3.bf16.msra.mxu0 %v289_v4  ;;  %v298_v13 = vpack.c.bf16 %v111_v10, %v110_v9  ;;  %v113_v15 = vld [vmem:[%s464_s3 + $0x28] sm:$0xff] }
   0x5   :  { %291 = vmatprep.subr.bf16.mxu0 %v346_v3  ;;  %296 = vmatpush3.bf16.msra.mxu1 %v295_v12 }
   0x6   :  { %297 = vmatprep.subr.bf16.mxu1 %v346_v3 }
   0x7   :  { %10 = vsyncpa [#allocation3], 0  ;;  %v21_v16 = vld [vmem:[%s461_s0] sm:$0xff]  ;;  %vm33_vm1 = vcmask 261120   ;;  %v301_v17 = vpack.c.bf16 %v113_v15, %v112_v14  ;;  %v114_v18 = vld [vmem:[%s464_s3 + $0x30] sm:$0xff]  ;;  %s349_s11 = smov [#allocation2]  }
   0x8   :  { %293 = vmatpush3.bf16.msra.mxu0 %v292_v11  ;;  %v115_v19 = vld [vmem:[%s464_s3 + $0x38] sm:$0xff]  ;;  %v116_v21 = vld [vmem:[%s464_s3 + $0x40] sm:$0xff]  ;;  %v117_v22 = vld [vmem:[%s464_s3 + $0x48] sm:$0xff]  ;;  %s209_s12 = sshll.u32 %s349_s11, 4  ;;  %vm201_vm2 = vcmask 130048   ;;  %s210_s12 = int_to_ptr.vmem [resolvable:$true] %s209_s12 }
   0x9   :  { %299 = vmatpush3.bf16.msra.mxu1 %v298_v13  ;;  %v304_v20 = vpack.c.bf16 %v115_v19, %v114_v18  ;;  %v307_v23 = vpack.c.bf16 %v117_v22, %v116_v21  ;;  %v118_v24 = vld [vmem:[%s464_s3 + $0x50] sm:$0xff]  ;;  %v119_v25 = vld [vmem:[%s464_s3 + $0x58] sm:$0xff]  ;;  %v120_v27 = vld [vmem:[%s464_s3 + $0x60] sm:$0xff]  ;;  %p327_p1 = scmp.lt.s32.totalorder %s210_s12, %s210_s12 }
   0xa   :  { %300 = vmatprep.subr.bf16.mxu1 %v346_v3  ;;  %v310_v26 = vpack.c.bf16 %v119_v25, %v118_v24  ;;  %v121_v28 = vld [vmem:[%s464_s3 + $0x68] sm:$0xff]  ;;  %v122_v30 = vld [vmem:[%s464_s3 + $0x70] sm:$0xff]  ;;  %v123_v31 = vld [vmem:[%s464_s3 + $0x78] sm:$0xff]  ;;  %s322_s3 = scalar_lea.vmem %s210_s12, 128 }
   0xb   :  { %251 = vmatmul.mubr.msk.f32.vlgmr.msra.gmra.mrb[0].mxu0 %vm33_vm1, %v21_v16  ;;  %v313_v29 = vpack.c.bf16 %v121_v28, %v120_v27  ;;  %v316_v32 = vpack.c.bf16 %v123_v31, %v122_v30  ;;  %v217_v33 = vld [vmem:[%s463_s2] ss:$0 sm:$0xff]  ;;  %p323_p0 = scmp.ne.s32.totalorder %s210_s12, %s322_s3  ;;  %p328_p2 = scmp.lt.s32.totalorder %s322_s3, %s322_s3 }
   0xc   :  { %v219_v38 = vld [vmem:[%s465_s4] ss:$0 sm:$0xff] }
   0xd   :  { %302 = vmatpush3.bf16.msra.mxu1 %v301_v17  ;;  %p329_p3 = por %p328_p2, %p327_p1 }
   0xe   :  { %303 = vmatprep.subr.bf16.mxu1 %v346_v3 }
   0xf   :  { %p330_p4 = pnand %p329_p3, %p323_p0 }
  0x11   :  { %305 = vmatpush3.bf16.msra.mxu1 %v304_v20 }
  0x12   :  { %306 = vmatprep.subr.bf16.mxu1 %v346_v3 }
  0x15   :  { %308 = vmatpush3.bf16.msra.mxu1 %v307_v23 }
  0x16   :  { %309 = vmatprep.subr.bf16.mxu1 %v346_v3 }
  0x19   :  { %311 = vmatpush3.bf16.msra.mxu1 %v310_v26 }
  0x1a   :  { %312 = vmatprep.subr.bf16.mxu1 %v346_v3 }
  0x1d   :  { %314 = vmatpush3.bf16.msra.mxu1 %v313_v29 }
  0x1e   :  { %315 = vmatprep.subr.bf16.mxu1 %v346_v3 }
  0x21   :  { %317 = vmatpush3.bf16.msra.mxu1 %v316_v32 }
  0xde   :  { %v103_v34 = vpop.f32.mrb[0].mxu0 }
  0xdf   :  { %v104_v35 = vadd.f32 %v217_v33, %v103_v34  ;;  %v252_v36 = vpop.f32.mrb[1].mxu0 }
  0xe1   :  { %v107_v37 = vmax.f32 %v104_v35, 0.0 }
  0xe3   :  { %286 = vmatmul.mubr.f32.vlgmr.msra.gmra.mrb[0].mxu1 %v107_v37 }
 0x1b6   :  { %v197_v39 = vpop.f32.mrb[0].mxu1 }
 0x1b7   :  { %v198_v40 = vadd.f32 %v219_v38, %v197_v39  ;;  %v287_v41 = vpop.f32.mrb[1].mxu1 }
 0x1b9   :  { %202 = vst.msk [vmem:[#allocation2] sm:$0xff] %vm201_vm2, %v198_v40 }
 0x1ba   :  { %333 = shalt.err (!%p330_p4)
}
 0x1bb   :  { %s334_s14 = scalar_lea.hbm %s466_s5, 128 }
 0x1bc   :  { %p335_p5 = scmp.ne.s32.totalorder %s466_s5, %s334_s14  ;;  %p338_p6 = scmp.lt.u32.totalorder %s334_s14, %s466_s5 }
 0x1be   :  { %p340_p7 = pnand %p338_p6, %p335_p5 }
 0x1c0   :  { %343 = shalt.err (!%p340_p7)
}
 0x1c1   :  { %212 = dma.vmem_to_hbm [thread:$0]  %s210_s12, 128, %s466_s5, [#allocation3]  }
 0x1c2   :  { %344 = dma.done.wait [#allocation3], 128  }
 0x1c3   :  { %345 = vsyncadd [#allocation3], 4294967168 }
 0x1c4   :  { %216 = vsyncpa [#allocation3], 1 }

</bundles_post_ra>
